<compile_context>
chip_gen: v5e
topology: v5e:2x2
jax: 0.10.0
libtpu: 0.0.40
codegen_flags: <defaults>
</compile_context>

<pallas_src>
import jax
import jax.numpy as jnp
from jax.experimental import pallas as pl
from jax.experimental.pallas import tpu as pltpu


def linear_kernel(w_ref, b_ref, x_ref, o_ref):
    # w_ref: (1, 1) f32 in SMEM, b_ref: (1,) f32 in SMEM,
    # x_ref / o_ref: (1, P) f32 in VMEM (lane-dense slab).
    w = w_ref[0, 0]
    b = b_ref[0]
    o_ref[...] = x_ref[...] * w + b          # pure VPU multiply-add


def linear_forward(x, weight, bias):
    """Forward of nn.Linear(1, 1).

    x:      (N, 1) f32
    weight: (1, 1) f32  (PyTorch layout)
    bias:   (1,)   f32
    returns (N, 1) f32
    """
    n = x.shape[0]

    # Lane-dense layout: flatten and pad N up to a multiple of 128 lanes.
    pad = (-n) % 128
    padded = n + pad
    x_slab = jnp.pad(x.reshape(-1), (0, pad)).reshape(1, padded)

    y_slab = pl.pallas_call(
        linear_kernel,
        out_shape=jax.ShapeDtypeStruct((1, padded), x.dtype),
        in_specs=[
            pl.BlockSpec(memory_space=pltpu.MemorySpace.SMEM),   # weight scalar
            pl.BlockSpec(memory_space=pltpu.MemorySpace.SMEM),   # bias scalar
            pl.BlockSpec((1, padded), lambda: (0, 0)),           # x slab (VMEM)
        ],
        out_specs=pl.BlockSpec((1, padded), lambda: (0, 0)),
    )(weight, bias, x_slab)

    # Drop padding lanes; restore (N, 1).
    return y_slab[0, :n].reshape(n, 1)


if __name__ == "__main__":
    key = jax.random.PRNGKey(0)
    kx, kw, kb = jax.random.split(key, 3)

    # Input matching the PyTorch script: x = torch.randn(100, 1) * 10
    x = jax.random.normal(kx, (100, 1), dtype=jnp.float32) * 10.0

    # Deterministic params mirroring nn.Linear(1, 1) init:
    # uniform(-1/sqrt(in_f), 1/sqrt(in_f)) = uniform(-1, 1) for in_f = 1.
    weight = jax.random.uniform(kw, (1, 1), dtype=jnp.float32, minval=-1.0, maxval=1.0)
    bias = jax.random.uniform(kb, (1,), dtype=jnp.float32, minval=-1.0, maxval=1.0)

    y = linear_forward(x, weight, bias)
    y = jax.block_until_ready(y)

    # Reference check in plain JAX.
    y_ref = x @ weight.T + bias
    assert y.shape == (100, 1)
    assert jnp.allclose(y, y_ref, atol=1e-5, rtol=1e-5)

    print("KERNEL_OK")
</pallas_src>

<mosaic_0001>
module attributes {stable_mosaic.version = 11 : i64} {
  func.func @linear_kernel(%arg0: memref<1x1xf32, #tpu.memory_space<smem>>, %arg1: memref<1xf32, #tpu.memory_space<smem>>, %arg2: memref<1x128xf32, #tpu.memory_space<vmem>>, %arg3: memref<1x128xf32, #tpu.memory_space<vmem>>) attributes {dimension_semantics = [], scalar_prefetch = 0 : i64, scratch_operands = 0 : i64, tpu.core_type = #tpu.core_type<tc>} {
    %c0 = arith.constant 0 : index
    %c0_0 = arith.constant 0 : index
    %0 = memref.load %arg0[%c0, %c0_0] : memref<1x1xf32, #tpu.memory_space<smem>>
    %c0_1 = arith.constant 0 : index
    %1 = memref.load %arg1[%c0_1] : memref<1xf32, #tpu.memory_space<smem>>
    %c0_2 = arith.constant 0 : index
    %c0_3 = arith.constant 0 : index
    %2 = vector.load %arg2[%c0_2, %c0_3] : memref<1x128xf32, #tpu.memory_space<vmem>>, vector<1x128xf32>
    %3 = vector.broadcast %0 : f32 to vector<1x128xf32>
    %4 = arith.mulf %2, %3 : vector<1x128xf32>
    %5 = vector.broadcast %1 : f32 to vector<1x128xf32>
    %6 = arith.addf %4, %5 : vector<1x128xf32>
    %c0_4 = arith.constant 0 : index
    %c0_5 = arith.constant 0 : index
    %7 = vector.load %arg3[%c0_4, %c0_5] : memref<1x128xf32, #tpu.memory_space<vmem>>, vector<1x128xf32>
    tpu.vector_store %arg3[%c0_4, %c0_5], %6 {strides = array<i32>} : memref<1x128xf32, #tpu.memory_space<vmem>>, vector<1x128xf32>,
    return
  }
}

</mosaic_0001>

<bundles_post_ra>
// kernel: tpu_custom_call.1
= control target key start
LH: loop header
LB: loop body
LE: loop exit
PB: predicated region body
PF: predicated region fallthrough
CT: control target
= control target key end

     0   :  { %s101_s0 = inlined_call_operand.<no memory space> [shape: f32[1,1], index: 0, kind: input, shape index: {}]   ;;  %s102_s1 = inlined_call_operand.<no memory space> [shape: f32[1], index: 1, kind: input, shape index: {}]   ;;  %s103_s2 = inlined_call_operand.vmem [shape: f32[1,128], index: 2, kind: input, shape index: {}]   ;;  %s104_s3 = inlined_call_operand.hbm [shape: f32[1,128], index: 3, kind: output, shape index: {}]  }
   0x1   :  { %v19_v0 = vld [vmem:[%s103_s2] sm:$0x1]  ;;  %v20_v1 = vstv %s101_s0  ;;  %v22_v2 = vstv %s102_s1 }
   0x2   :  { %10 = vsyncpa [#allocation5], 0  ;;  %s32_s20 = sshll.u32 %s104_s3, 4  ;;  %v21_v3 = vmul.f32 %v20_v1, %v19_v0  ;;  %s68_s21 = smov [#allocation4]   ;;  %s33_s20 = int_to_ptr.hbm [resolvable:$true] %s32_s20 }
   0x3   :  { %s30_s22 = sshll.u32 %s68_s21, 4  ;;  %s31_s22 = int_to_ptr.vmem [resolvable:$true] %s30_s22 }
   0x4   :  { %v23_v4 = vadd.f32 %v22_v2, %v21_v3 }
   0x6   :  { %24 = vst [vmem:[#allocation4] sm:$0x1] %v23_v4 }
   0x7   :  { %35 = dma.vmem_to_hbm [thread:$0]  %s31_s22, 16, %s33_s20, [#allocation5]  }
   0x8   :  { %66 = dma.done.wait [#allocation5], 16  }
   0x9   :  { %67 = vsyncadd [#allocation5], 4294967280 }
   0xa   :  { %40 = vsyncpa [#allocation5], 1 }

</bundles_post_ra>
